<compile_context>
chip_gen: v7x
topology: tpu7x:2x2x1
jax: 0.10.0
libtpu: 0.0.40
codegen_flags: <defaults>
</compile_context>

<pallas_src>
import functools

import jax
import jax.numpy as jnp
from jax.experimental import pallas as pl
from jax.experimental.pallas import tpu as pltpu


_LANE = 128          # TPU lane width
_SUBLANE = 8         # TPU sublane width
_V_CHUNK = 512       # vocab chunk for the one-hot MXU gather
_TPB_SMALL_E = 512   # tokens per block when E_pad <= 512
_TPB_LARGE_E = 256   # tokens per block for wide embeddings


def _round_up(x, m):
    return (x + m - 1) // m * m


def _onehot_gather(idx_col, table_ref, v_chunk):
    """Gather table rows via a one-hot MXU matmul.

    idx_col : (tpb, 1) int32 token ids (loaded VMEM value)
    returns : (tpb, E_pad) float32
    """
    tpb = idx_col.shape[0]
    v_pad, _ = table_ref.shape
    acc = None
    for c in range(0, v_pad, v_chunk):      # static unroll over vocab chunks
        iota = jax.lax.broadcasted_iota(jnp.int32, (tpb, v_chunk), 1) + c
        onehot = (iota == idx_col).astype(table_ref.dtype)
        part = jnp.dot(
            onehot,
            table_ref[pl.ds(c, v_chunk), :],
            precision=jax.lax.Precision.HIGHEST,
            preferred_element_type=jnp.float32,
        )
        acc = part if acc is None else acc + part
    return acc


def _embed_kernel(idx_ref, table_ref, out_ref, *, v_chunk):
    """Eval mode: embedding gather only (dropout is identity)."""
    emb = _onehot_gather(idx_ref[...], table_ref, v_chunk)
    out_ref[...] = emb.astype(out_ref.dtype)


def _embed_dropout_kernel(idx_ref, table_ref, mask_ref, out_ref, *, v_chunk):
    """Train mode: gather with the keep*scale mask fused into the single store."""
    emb = _onehot_gather(idx_ref[...], table_ref, v_chunk)
    out_ref[...] = (emb * mask_ref[...].astype(jnp.float32)).astype(out_ref.dtype)


def word_embeddings_forward(words_seq, table, *, drop_out_rate=0.0,
                            train=False, seed=0):
    """Pallas equivalent of WordEmbeddings.forward(words_seq)."""
    B, S = words_seq.shape
    V, E = table.shape
    dtype = table.dtype

    # ---- pad embed dim to a lane multiple, vocab to a chunk/sublane multiple
    E_pad = _round_up(E, _LANE)
    if V <= _V_CHUNK:
        V_pad = _round_up(V, _SUBLANE)
        v_chunk = V_pad
    else:
        V_pad = _round_up(V, _V_CHUNK)
        v_chunk = _V_CHUNK
    if (V_pad, E_pad) != (V, E):
        table = jnp.pad(table, ((0, V_pad - V), (0, E_pad - E)))

    # ---- token tiling -------------------------------------------------------
    n_tokens = B * S
    tpb_target = _TPB_SMALL_E if E_pad <= 512 else _TPB_LARGE_E
    tpb = tpb_target if n_tokens >= tpb_target else _round_up(n_tokens, _SUBLANE)
    n_total = _round_up(n_tokens, tpb)
    num_blocks = n_total // tpb

    idx = words_seq.reshape(-1).astype(jnp.int32)
    if n_total != n_tokens:
        idx = jnp.pad(idx, (0, n_total - n_tokens))   # pad with id 0 (zero row)
    idx = idx.reshape(n_total, 1)

    use_dropout = bool(train) and float(drop_out_rate) > 0.0

    # ---- VMEM budget from the actual working set ----------------------------
    itemsize = jnp.dtype(dtype).itemsize
    working = (
        2 * V_pad * E_pad * itemsize                      # table buffers
        + 2 * tpb * E_pad * itemsize                      # output tiles
        + 2 * tpb * 4                                     # id tiles
        + (2 * tpb * E_pad * itemsize if use_dropout else 0)  # mask tiles
        + tpb * v_chunk * 4 + tpb * E_pad * 4             # one-hot + accumulator
    )
    try:
        cap = int(pltpu.get_tpu_info().vmem_capacity_bytes) - (16 << 20)
    except Exception:
        cap = 48 << 20                                    # safe on every generation
    vmem_limit = int(min(max(working + (8 << 20), 32 << 20), max(cap, 32 << 20)))

    # ---- specs / args -------------------------------------------------------
    in_specs = [
        pl.BlockSpec((tpb, 1), lambda i: (i, 0)),         # token ids, per block
        pl.BlockSpec((V_pad, E_pad), lambda i: (0, 0)),   # table, grid-invariant
    ]
    args = [idx, table]

    if use_dropout:
        p = float(drop_out_rate)
        if p >= 1.0:
            mask = jnp.zeros((n_total, E_pad), dtype)
        else:
            keep = jax.random.bernoulli(jax.random.PRNGKey(seed), 1.0 - p,
                                        (n_total, E_pad))
            mask = keep.astype(dtype) * jnp.asarray(1.0 / (1.0 - p), dtype)
        in_specs.append(pl.BlockSpec((tpb, E_pad), lambda i: (i, 0)))
        args.append(mask)
        kernel = functools.partial(_embed_dropout_kernel, v_chunk=v_chunk)
    else:
        kernel = functools.partial(_embed_kernel, v_chunk=v_chunk)

    out_flat = pl.pallas_call(
        kernel,
        out_shape=jax.ShapeDtypeStruct((n_total, E_pad), dtype),
        grid=(num_blocks,),
        in_specs=in_specs,
        out_specs=pl.BlockSpec((tpb, E_pad), lambda i: (i, 0)),
        compiler_params=pltpu.CompilerParams(
            dimension_semantics=("parallel",),
            vmem_limit_bytes=vmem_limit,
        ),
    )(*args)

    # Only pay for a slice when padding was actually added.
    if (n_total, E_pad) != (n_tokens, E):
        out_flat = out_flat[:n_tokens, :E]
    return out_flat.reshape(B, S, E)


def make_pretrained_embed_matrix(key, vocab_size, embed_dim):
    """Deterministic stand-in for the pre-trained embedding matrix."""
    w = jax.random.normal(key, (vocab_size, embed_dim), dtype=jnp.float32)
    w = w.at[0].set(0.0)     # padding_idx=0 row is zero, as in nn.Embedding
    return w


if __name__ == "__main__":
    key = jax.random.PRNGKey(0)
    k_tab, k_idx = jax.random.split(key)

    VOCAB, EMBED = 32, 128
    B, S = 2, 8
    DROP = 0.1

    table = make_pretrained_embed_matrix(k_tab, VOCAB, EMBED)
    words_seq = jax.random.randint(k_idx, (B, S), 0, VOCAB, dtype=jnp.int32)

    # Eval-mode forward (dropout is identity): must match the gather.
    out = word_embeddings_forward(words_seq, table,
                                  drop_out_rate=DROP, train=False)
    out = jax.block_until_ready(out)
    ref = jnp.take(table, words_seq, axis=0)
    assert out.shape == (B, S, EMBED)
    assert jnp.allclose(out, ref, atol=1e-5, rtol=1e-5), "eval-mode mismatch"

    # Training-mode smoke test (fused dropout mask path).
    out_tr = word_embeddings_forward(words_seq, table,
                                     drop_out_rate=DROP, train=True, seed=123)
    out_tr = jax.block_until_ready(out_tr)
    assert out_tr.shape == (B, S, EMBED)
    assert bool(jnp.all(jnp.isfinite(out_tr)))
    scaled = ref * (1.0 / (1.0 - DROP))
    ok = (jnp.isclose(out_tr, scaled, atol=1e-5, rtol=1e-5)
          | jnp.isclose(out_tr, 0.0, atol=1e-6))
    assert bool(jnp.all(ok)), "train-mode values are neither kept*scale nor 0"

    print("KERNEL_OK")
</pallas_src>

<mosaic_0001>
module attributes {stable_mosaic.version = 11 : i64} {
  func.func @_embed_kernel(%arg0: i32, %arg1: memref<16x1xi32, #tpu.memory_space<vmem>>, %arg2: memref<32x128xf32, #tpu.memory_space<vmem>>, %arg3: memref<16x128xf32, #tpu.memory_space<vmem>>) attributes {dimension_semantics = [#tpu.dimension_semantics<parallel>], iteration_bounds = array<i64: 1>, scalar_prefetch = 0 : i64, scratch_operands = 0 : i64, tpu.core_type = #tpu.core_type<tc>, window_params = [{transform_indices = @transform_0, window_bounds = array<i64: 16, 1>}, {pipeline_mode = #tpu.pipeline_mode<synchronous>, transform_indices = @transform_1, window_bounds = array<i64: 32, 128>}, {transform_indices = @transform_2, window_bounds = array<i64: 16, 128>}]} {
    %c0 = arith.constant 0 : index
    %c0_0 = arith.constant 0 : index
    %0 = vector.load %arg1[%c0, %c0_0] : memref<16x1xi32, #tpu.memory_space<vmem>>, vector<16x1xi32>
    %1 = tpu.iota {dimensions = array<i32: 1>} : vector<16x32xi32>
    %c0_i32 = arith.constant 0 : i32
    %2 = vector.broadcast %c0_i32 : i32 to vector<16x32xi32>
    %3 = arith.addi %1, %2 : vector<16x32xi32>
    %4 = vector.broadcast %0 : vector<16x1xi32> to vector<16x32xi32>
    %5 = arith.cmpi eq, %3, %4 : vector<16x32xi32>
    %6 = arith.extui %5 : vector<16x32xi1> to vector<16x32xi32>
    %7 = arith.sitofp %6 : vector<16x32xi32> to vector<16x32xf32>
    %c0_1 = arith.constant 0 : index
    %c0_2 = arith.constant 0 : index
    %8 = vector.load %arg2[%c0_1, %c0_2] : memref<32x128xf32, #tpu.memory_space<vmem>>, vector<32x128xf32>
    %cst = arith.constant dense<0.000000e+00> : vector<16x128xf32>
    %9 = tpu.matmul %7, %8, %cst {dimension_numbers = #tpu.dot_dimension_numbers<[1], [0], [0], [1], [0, 0, 1, 1], [], []>, precision = #tpu.contract_precision<fp32>} : vector<16x32xf32>, vector<32x128xf32>, vector<16x128xf32> -> vector<16x128xf32>
    %c0_3 = arith.constant 0 : index
    %c0_4 = arith.constant 0 : index
    %10 = vector.load %arg3[%c0_3, %c0_4] : memref<16x128xf32, #tpu.memory_space<vmem>>, vector<16x128xf32>
    tpu.vector_store %arg3[%c0_3, %c0_4], %9 {strides = array<i32>} : memref<16x128xf32, #tpu.memory_space<vmem>>, vector<16x128xf32>,
    return
  }
  func.func @transform_0(%arg0: i32) -> (i32, i32) {
    %c0_i32 = arith.constant 0 : i32
    %c0_i32_0 = arith.constant 0 : i32
    return %arg0, %c0_i32 : i32, i32
  }
  func.func @transform_1(%arg0: i32) -> (i32, i32) {
    %c0_i32 = arith.constant 0 : i32
    %c0_i32_0 = arith.constant 0 : i32
    %c0_i32_1 = arith.constant 0 : i32
    return %c0_i32, %c0_i32_0 : i32, i32
  }
  func.func @transform_2(%arg0: i32) -> (i32, i32) {
    %c0_i32 = arith.constant 0 : i32
    %c0_i32_0 = arith.constant 0 : i32
    return %arg0, %c0_i32 : i32, i32
  }
}

</mosaic_0001>

<bundles_post_ra>
// kernel: tpu_custom_call.1
= control target key start
LH: loop header
LB: loop body
LE: loop exit
PB: predicated region body
PF: predicated region fallthrough
CT: control target
= control target key end

     0   :  { %7 = vsyncpa [#allocation3], 0  ;;  %s904_s0 = inlined_call_operand.vmem [shape: s32[16,1], index: 0, kind: input, shape index: {}]   ;;  %s905_s1 = inlined_call_operand.hbm [shape: f32[32,128], index: 1, kind: input, shape index: {}]   ;;  %s906_s2 = inlined_call_operand.hbm [shape: f32[16,128], index: 2, kind: output, shape index: {}]  }
   0x1   :  { %8 = vsyncpa [#allocation4], 0  ;;  %s823_s9 = smov [#allocation2]   ;;  %s775_s13 = scalar_lea.hbm %s905_s1, 512 }
   0x2   :  { %s16_s10 = sshll.u32 %s823_s9, 4  ;;  %p776_p0 = scmp.ne.s32.totalorder %s905_s1, %s775_s13  ;;  %s17_s10 = int_to_ptr.vmem [resolvable:$true] %s16_s10 }
   0x3   :  { %p779_p1 = scmp.lt.u32.totalorder %s775_s13, %s905_s1 }
   0x5   :  { %p781_p2 = pnand %p779_p1, %p776_p0 }
   0x7   :  { %784 = shalt.err (!%p781_p2)
}
   0x8   :  { %s785_s18 = scalar_lea.vmem %s17_s10, 512  ;;  %p790_p4 = scmp.lt.s32.totalorder %s17_s10, %s17_s10 }
   0x9   :  { %p786_p3 = scmp.ne.s32.totalorder %s17_s10, %s785_s18  ;;  %p791_p5 = scmp.lt.s32.totalorder %s785_s18, %s785_s18 }
   0xb   :  { %p792_p6 = por %p791_p5, %p790_p4 }
   0xd   :  { %p793_p7 = pnand %p792_p6, %p786_p3 }
   0xf   :  { %796 = shalt.err (!%p793_p7)
}
  0x10   :  { %s824_s19 = smov 128   ;;  %s825_s20 = smov 8  }
  0x11   :  { %22 = dma.hbm_to_vmem [thread:$0]  %s905_s1, 512, %s17_s10, [#allocation3], %s824_s19, %s824_s19, %s825_s20  }
  0x12   :  { %819 = dma.done.wait [#allocation3], 512  }
  0x13   :  { %820 = vsyncadd [#allocation3], 4294966784  ;;  %v826_v0 = vmov 0   ;;  %v26_v1 = vld [vmem:[%s904_s0] sm:$0xff]  ;;  %v43_v3 = vld [vmem:[#allocation2 + $0x8] sm:$0xff]  ;;  %v28_v35 = vlaneseq  ;;  %vm46_vm0 = vcmask 261120  }
  0x14   :  { %774 = vset.pattern.permute.xlu0 %v826_v0  ;;  %v42_v2 = vld [vmem:[#allocation2] sm:$0xff]  ;;  %v27_v5 = vld [vmem:[%s904_s0 + $0x8] sm:$0xff]  ;;  %v57_v6 = vand.u32 4294901760, %v43_v3  ;;  %v44_v7 = vld [vmem:[#allocation2 + $0x10] sm:$0xff]  ;;  %v827_v38 = vmov 0.0   ;;  %s828_s0 = smov [#allocation5]  }
  0x15   :  { %31 = vperm.xlu0 %774, %v26_v1   ;;  %v54_v4 = vand.u32 4294901760, %v42_v2  ;;  %v45_v8 = vld [vmem:[#allocation2 + $0x18] sm:$0xff]  ;;  %v60_v10 = vand.u32 4294901760, %v44_v7  ;;  %v29_v36 = vand.u32 127, %v28_v35  ;;  %s588_s1 = sshll.u32 %s828_s0, 4  ;;  %s589_s1 = int_to_ptr.vmem [resolvable:$true] %s588_s1 }
  0x16   :  { %v63_v11 = vand.u32 4294901760, %v45_v8  ;;  %v151_v14 = vsub.f32 %v43_v3, %v57_v6  ;;  %s797_s27 = scalar_lea.vmem %s589_s1, 256  ;;  %p802_p9 = scmp.lt.s32.totalorder %s589_s1, %s589_s1 }
  0x17   :  { %v865_v9 = vpack.c.bf16 %v57_v6, %v54_v4  ;;  %v144_v13 = vsub.f32 %v42_v2, %v54_v4  ;;  %v158_v20 = vsub.f32 %v44_v7, %v60_v10  ;;  %p798_p8 = scmp.ne.s32.totalorder %s589_s1, %s797_s27  ;;  %p803_p10 = scmp.lt.s32.totalorder %s797_s27, %s797_s27 }
  0x18   :  { %v869_v12 = vpack.c.bf16 %v63_v11, %v60_v10  ;;  %v152_v16 = vand.u32 4294901760, %v151_v14  ;;  %v165_v21 = vsub.f32 %v45_v8, %v63_v11 }
  0x19   :  { %34 = vperm.xlu0 %774, %v27_v5   ;;  %735 = vmatprep.subr.bf16.mxu0 %v865_v9  ;;  %v145_v15 = vand.u32 4294901760, %v144_v13  ;;  %v159_v24 = vand.u32 4294901760, %v158_v20  ;;  %v726_v33 = vpack.c.bf16 %v151_v14, %v144_v13  ;;  %p804_p11 = por %p803_p10, %p802_p9 }
  0x1a   :  { %711 = vmatprep.subr.bf16.mxu1 %v865_v9  ;;  %737 = vmatpush3.bf16.msra.mxu0 %v865_v9  ;;  %v153_v19 = vsub.f32 %v151_v14, %v152_v16  ;;  %v166_v25 = vand.u32 4294901760, %v165_v21  ;;  %v730_v34 = vpack.c.bf16 %v165_v21, %v158_v20 }
  0x1b   :  { %713 = vmatpush3.bf16.msra.mxu1 %v865_v9  ;;  %739 = vmatprep.subr.bf16.mxu0 %v869_v12  ;;  %v742_v17 = vpack.c.bf16 %v152_v16, %v145_v15  ;;  %v146_v18 = vsub.f32 %v144_v13, %v145_v15  ;;  %v160_v28 = vsub.f32 %v158_v20, %v159_v24  ;;  %p805_p12 = pnand %p804_p11, %p798_p8 }
  0x1c   :  { %715 = vmatprep.subr.bf16.mxu1 %v869_v12  ;;  %v154_v23 = vand.u32 4294901760, %v153_v19  ;;  %v746_v27 = vpack.c.bf16 %v166_v25, %v159_v24  ;;  %v167_v29 = vsub.f32 %v165_v21, %v166_v25 }
  0x1d   :  { %v147_v22 = vand.u32 4294901760, %v146_v18  ;;  %v161_v30 = vand.u32 4294901760, %v160_v28 }
  0x1e   :  { %741 = vmatpush3.bf16.msra.mxu0 %v869_v12  ;;  %v168_v31 = vand.u32 4294901760, %v167_v29 }
  0x1f   :  { %717 = vmatpush3.bf16.msra.mxu1 %v869_v12  ;;  %743 = vmatprep.subr.bf16.mxu0 %v742_v17  ;;  %v718_v26 = vpack.c.bf16 %v154_v23, %v147_v22 }
  0x20   :  { %v722_v32 = vpack.c.bf16 %v168_v31, %v161_v30 }
  0x21   :  { %719 = vmatprep.subr.bf16.mxu1 %v718_v26 }
  0x94   :  { %v32_v37 = vpop.permute.xlu0 %31 }
  0x95   :  { %vm36_vm1 = vcmp.eq.s32.totalorder %v29_v36, %v32_v37 }
  0x96   :  { %v600_v39 = vsel %vm36_vm1, 1.0, %v827_v38 }
  0x97   :  { %v48_v40 = vsel %vm46_vm0, %v600_v39, 0 }
  0x98   :  { %v123_v41 = vsub.f32 %v48_v40, %v48_v40  ;;  %v35_v42 = vpop.permute.xlu0 %34 }
  0x99   :  { %vm37_vm2 = vcmp.eq.s32.totalorder %v29_v36, %v35_v42 }
  0x9a   :  { %v601_v43 = vsel %vm37_vm2, 1.0, %v827_v38  ;;  %v124_v44 = vand.u32 4294901760, %v123_v41 }
  0x9b   :  { %v51_v45 = vsel %vm46_vm0, %v601_v43, 0 }
  0x9c   :  { %v133_v46 = vsub.f32 %v51_v45, %v51_v45  ;;  %685 = vmatprep.mubr.f32.mxu0 %v124_v44  ;;  %v125_v47 = vsub.f32 %v123_v41, %v124_v44 }
  0x9e   :  { %v126_v48 = vand.u32 4294901760, %v125_v47  ;;  %v134_v49 = vand.u32 4294901760, %v133_v46 }
  0xa0   :  { %652 = vmatprep.mubr.f32.mxu1 %v126_v48  ;;  %686 = vmatmul.mubr.f32.vlgmr.msra.gmra.mrb[0].mxu0 %v134_v49  ;;  %v135_v50 = vsub.f32 %v133_v46, %v134_v49 }
  0xa1   :  { %745 = vmatpush3.bf16.msra.mxu0 %v742_v17  ;;  %696 = vmatprep.mubr.msk.f32.mxu0 %vm46_vm0, %v600_v39 }
  0xa2   :  { %v136_v51 = vand.u32 4294901760, %v135_v50  ;;  %747 = vmatprep.subr.bf16.mxu0 %v746_v27 }
  0xa4   :  { %653 = vmatmul.mubr.f32.vlgmr.msra.gmra.mrb[0].mxu1 %v136_v51 }
  0xa5   :  { %721 = vmatpush3.bf16.msra.mxu1 %v718_v26  ;;  %663 = vmatprep.mubr.msk.f32.mxu1 %vm46_vm0, %v600_v39 }
  0xa6   :  { %749 = vmatpush3.bf16.msra.mxu0 %v746_v27  ;;  %723 = vmatprep.subr.bf16.mxu1 %v722_v32 }
  0xa7   :  { %751 = vmatprep.subr.bf16.mxu0 %v865_v9 }
  0xa9   :  { %725 = vmatpush3.bf16.msra.mxu1 %v722_v32  ;;  %697 = vmatmul.mubr.msk.f32.vlgmr.msra.gmra.mrb[0].mxu0 %vm46_vm0, %v601_v43 }
  0xaa   :  { %753 = vmatpush3.bf16.msra.mxu0 %v865_v9  ;;  %707 = vmatprep.mubr.msk.f32.mxu0 %vm46_vm0, %v600_v39 }
  0xab   :  { %727 = vmatprep.subr.bf16.mxu1 %v726_v33  ;;  %755 = vmatprep.subr.bf16.mxu0 %v869_v12 }
  0xac   :  { %664 = vmatmul.mubr.msk.f32.vlgmr.msra.gmra.mrb[0].mxu1 %vm46_vm0, %v601_v43 }
  0xad   :  { %729 = vmatpush3.bf16.msra.mxu1 %v726_v33  ;;  %674 = vmatprep.mubr.f32.mxu1 %v123_v41 }
  0xae   :  { %757 = vmatpush3.bf16.msra.mxu0 %v869_v12  ;;  %731 = vmatprep.subr.bf16.mxu1 %v730_v34 }
  0xb1   :  { %733 = vmatpush3.bf16.msra.mxu1 %v730_v34  ;;  %708 = vmatmul.mubr.msk.f32.vlgmr.msra.gmra.mrb[0].mxu0 %vm46_vm0, %v601_v43 }
  0xb4   :  { %675 = vmatmul.mubr.f32.vlgmr.msra.gmra.mrb[0].mxu1 %v133_v46 }
 0x184   :  { %v709_v52 = vpop.f32.mrb[0].mxu0 }
 0x185   :  { %v571_v53 = vpop.f32.mrb[1].mxu0 }
 0x187   :  { %v676_v54 = vpop.f32.mrb[0].mxu1 }
 0x188   :  { %v758_v55 = vadd.f32 %v709_v52, %v676_v54  ;;  %v315_v56 = vpop.f32.mrb[1].mxu1 }
 0x189   :  { %v759_v57 = vadd.f32 %v571_v53, %v315_v56 }
 0x18a   :  { %582 = vst [vmem:[#allocation5 + $0x8] sm:$0xff] %v758_v55 }
 0x18b   :  { %581 = vst [vmem:[#allocation5] sm:$0xff] %v759_v57 }
 0x18c   :  { %808 = shalt.err (!%p805_p12)
}
 0x18d   :  { %s809_s30 = scalar_lea.hbm %s906_s2, 256 }
 0x18e   :  { %p810_p13 = scmp.ne.s32.totalorder %s906_s2, %s809_s30  ;;  %p813_p0 = scmp.lt.u32.totalorder %s809_s30, %s906_s2 }
 0x190   :  { %p815_p1 = pnand %p813_p0, %p810_p13 }
 0x192   :  { %818 = shalt.err (!%p815_p1)
}
 0x193   :  { %594 = dma.vmem_to_hbm [thread:$0]  %s589_s1, 256, %s906_s2, [#allocation4], %s824_s19, %s824_s19, %s825_s20  }
 0x194   :  { %821 = dma.done.wait [#allocation4], 256  }
 0x195   :  { %822 = vsyncadd [#allocation4], 4294967040 }
 0x196   :  { %598 = vsyncpa [#allocation3], 1 }
 0x197   :  { %599 = vsyncpa [#allocation4], 1 }

</bundles_post_ra>
